<compile_context>
chip_gen: v6e
topology: v6e:2x2x1
jax: 0.10.0
libtpu: 0.0.40
codegen_flags: <defaults>
</compile_context>

<pallas_src>
import functools

import jax
import jax.numpy as jnp
from jax import lax
from jax.experimental import pallas as pl
from jax.experimental.pallas import tpu as pltpu


def _nonlocal_kernel(x_ref, wgtp_ref, bgtp_ref, ww_ref, bw_ref, out_ref,
                     proj_ref, yacc_ref, *, tj, cip):
    j = pl.program_id(1)

    # First key tile of this batch element: run the fused 1x1 projections once
    # and zero the y accumulator.
    @pl.when(j == 0)
    def _():
        x = x_ref[0]                                            # (C, HW) f32
        proj_ref[...] = (
            jnp.dot(wgtp_ref[...], x, preferred_element_type=jnp.float32)
            + bgtp_ref[...])
        yacc_ref[...] = jnp.zeros_like(yacc_ref)

    off = pl.multiple_of(j * tj, tj)
    g_j = proj_ref[pl.ds(0, cip), pl.ds(off, tj)]               # (Ci_pad, TJ)
    theta = proj_ref[pl.ds(cip, cip), :]                        # (Ci_pad, HW)
    phi_j = proj_ref[pl.ds(2 * cip, cip), pl.ds(off, tj)]       # (Ci_pad, TJ)

    # f[i, j] = <theta[:, i], phi[:, j]> -- contract the channel axis directly
    # (no transposed copy); bf16 operands, f32 accumulation on the MXU.
    f_j = lax.dot_general(
        theta.astype(jnp.bfloat16), phi_j.astype(jnp.bfloat16),
        (((0,), (0,)), ((), ())),
        preferred_element_type=jnp.float32)                     # (HW, TJ)

    # torch F.softmax(f, dim=1): normalize over the query axis i (axis 0 here).
    # Every column is fully resident inside a key tile, so the stats are exact.
    m_j = jnp.max(f_j, axis=0, keepdims=True)                   # (1, TJ)
    e_j = jnp.exp(f_j - m_j)                                    # f32, in (0,1]
    r_j = pl.reciprocal(jnp.sum(e_j, axis=0, keepdims=True), approx=True)

    # Fold the normalization into g and accumulate
    #   y[c, i] += sum_{j in tile} g[c, j] * r[j] * e[i, j]
    gr = (g_j * r_j).astype(jnp.bfloat16)                       # (Ci_pad, TJ)
    yacc_ref[...] += lax.dot_general(
        gr, e_j.astype(jnp.bfloat16),
        (((1,), (1,)), ((), ())),
        preferred_element_type=jnp.float32)                     # (Ci_pad, HW)

    # Last key tile: final 1x1 conv W and lane-dense store.
    @pl.when(j == pl.num_programs(1) - 1)
    def _():
        z = (jnp.dot(ww_ref[...], yacc_ref[...],
                     preferred_element_type=jnp.float32) + bw_ref[...])
        out_ref[0] = z.astype(out_ref.dtype)


def _round_up(n, m):
    return (n + m - 1) // m * m


def _pick_key_tile(hw):
    for c in (512, 384, 256, 128):
        if hw % c == 0:
            return c
    return hw   # small / non-128-multiple spatial sizes: single tile


def patch_nonlocal_block_2d(x, params, key_tile=None):
    """x: (B, C, H, W) float32; params: PyTorch-layout 1x1 conv weights."""
    B, C, H, W = x.shape
    HW = H * W
    Ci = params["w_g"].shape[0]          # inter_channels
    assert params["w_w"].shape == (C, Ci)
    cip = _round_up(Ci, 8)

    tj = _pick_key_tile(HW) if key_tile is None else key_tile
    assert HW % tj == 0, "key_tile must divide H*W"
    nj = HW // tj

    # Channels-first: no NCHW<->NHWC transposes, just a reshape.
    x_cf = x.reshape(B, C, HW).astype(jnp.float32)

    # Fuse g/theta/phi into one zero-padded (3*Ci_pad, C) weight (+ biases).
    w_gtp = jnp.zeros((3 * cip, C), jnp.float32)
    b_gtp = jnp.zeros((3 * cip, 1), jnp.float32)
    for k, name in enumerate(("g", "theta", "phi")):
        w_gtp = w_gtp.at[k * cip:k * cip + Ci].set(
            params["w_" + name].astype(jnp.float32))
        b_gtp = b_gtp.at[k * cip:k * cip + Ci, 0].set(
            params["b_" + name].astype(jnp.float32))
    w_w = jnp.zeros((C, cip), jnp.float32).at[:, :Ci].set(
        params["w_w"].astype(jnp.float32))
    b_w = params["b_w"].astype(jnp.float32).reshape(C, 1)

    const2d = lambda shape: pl.BlockSpec(shape, lambda b, j: (0, 0))

    # Scoped-VMEM budget: I/O blocks + scratches + per-tile intermediates,
    # with headroom; clamped so it is valid on every chip (<= v7x physical).
    est = 4 * (4 * C * HW + 4 * cip * HW + 4 * HW * tj
               + 2 * (3 * cip * C + 3 * cip + C * cip + C))
    vmem_limit = int(min(max(2 * est, 32 * 1024 * 1024), 64 * 1024 * 1024))

    out_cf = pl.pallas_call(
        functools.partial(_nonlocal_kernel, tj=tj, cip=cip),
        out_shape=jax.ShapeDtypeStruct((B, C, HW), jnp.float32),
        grid_spec=pltpu.PrefetchScalarGridSpec(
            num_scalar_prefetch=0,
            grid=(B, nj),
            in_specs=[
                pl.BlockSpec((1, C, HW), lambda b, j: (b, 0, 0)),   # x
                const2d((3 * cip, C)),    # fused w_{g,theta,phi}
                const2d((3 * cip, 1)),    # fused biases
                const2d((C, cip)),        # w_W
                const2d((C, 1)),          # b_W
            ],
            out_specs=pl.BlockSpec((1, C, HW), lambda b, j: (b, 0, 0)),
            scratch_shapes=[
                pltpu.VMEM((3 * cip, HW), jnp.float32),   # g/theta/phi proj
                pltpu.VMEM((cip, HW), jnp.float32),       # y accumulator
            ]),
        compiler_params=pltpu.CompilerParams(
            dimension_semantics=("parallel", "arbitrary"),
            vmem_limit_bytes=vmem_limit),
    )(x_cf, w_gtp, b_gtp, w_w, b_w)
    # TODO(synk): for B == 1 on v7x (2 TCs) a parallel query-tile axis with a
    # separate column-stats pass would be needed to occupy both cores.
    return out_cf.reshape(B, C, H, W)


def reference_jax(x, params):
    """Pure-JAX reference mirroring the PyTorch forward (for verification)."""
    B, C, H, W = x.shape
    xf = x.reshape(B, C, H * W).astype(jnp.float32)
    proj = lambda w, b: jnp.einsum("oc,bcn->bon", w, xf) + b[None, :, None]
    g = proj(params["w_g"], params["b_g"])          # (B, Ci, HW)
    th = proj(params["w_theta"], params["b_theta"])
    ph = proj(params["w_phi"], params["b_phi"])
    f = jnp.einsum("bci,bcj->bij", th, ph)          # (B, HW, HW)
    p = jax.nn.softmax(f, axis=1)                   # torch dim=1 (query axis)
    y = jnp.einsum("bij,bcj->bci", p, g)            # (B, Ci, HW)
    z = (jnp.einsum("oc,bcn->bon", params["w_w"], y)
         + params["b_w"][None, :, None])
    return z.reshape(B, C, H, W)


def make_params(key, in_channels, inter_channels, zero_W=True):
    ks = jax.random.split(key, 8)
    scale = 1.0 / jnp.sqrt(in_channels)
    p = {
        "w_g": jax.random.normal(ks[0], (inter_channels, in_channels), jnp.float32) * scale,
        "b_g": jax.random.normal(ks[1], (inter_channels,), jnp.float32) * scale,
        "w_theta": jax.random.normal(ks[2], (inter_channels, in_channels), jnp.float32) * scale,
        "b_theta": jax.random.normal(ks[3], (inter_channels,), jnp.float32) * scale,
        "w_phi": jax.random.normal(ks[4], (inter_channels, in_channels), jnp.float32) * scale,
        "b_phi": jax.random.normal(ks[5], (inter_channels,), jnp.float32) * scale,
    }
    if zero_W:
        # Faithful to nn.init.constant_(self.W.weight, 0) / bias 0.
        p["w_w"] = jnp.zeros((in_channels, inter_channels), jnp.float32)
        p["b_w"] = jnp.zeros((in_channels,), jnp.float32)
    else:
        p["w_w"] = jax.random.normal(ks[6], (in_channels, inter_channels), jnp.float32) * scale
        p["b_w"] = jax.random.normal(ks[7], (in_channels,), jnp.float32) * scale
    return p


if __name__ == "__main__":
    key = jax.random.PRNGKey(0)
    kx, kp = jax.random.split(key)

    B, C_in, H, W = 2, 4, 16, 16
    C_inter = 2
    x = jax.random.normal(kx, (B, C_in, H, W), jnp.float32)

    # Random-W check exercises the full numerics; key_tile=128 -> 2 key tiles,
    # exercising accumulation across the reduction grid axis.  Tolerances
    # account for bf16 MXU operands + approx reciprocal (f32 accumulation).
    params_chk = make_params(kp, C_in, C_inter, zero_W=False)
    out_chk = jax.block_until_ready(
        patch_nonlocal_block_2d(x, params_chk, key_tile=128))
    ref_chk = reference_jax(x, params_chk)
    assert out_chk.shape == (B, C_in, H, W)
    max_diff = float(jnp.max(jnp.abs(out_chk - ref_chk)))
    assert jnp.allclose(out_chk, ref_chk, atol=3e-2, rtol=3e-2), (
        f"mismatch vs reference, max abs diff = {max_diff}")

    # Faithful initialization (W conv zero-initialized as in the PyTorch
    # module), default single key tile.
    params = make_params(kp, C_in, C_inter, zero_W=True)
    out = jax.block_until_ready(patch_nonlocal_block_2d(x, params))
    assert out.shape == (B, C_in, H, W)
    assert jnp.allclose(out, reference_jax(x, params), atol=3e-2, rtol=3e-2)

    print("KERNEL_OK")
</pallas_src>

<mosaic_0001>
module attributes {stable_mosaic.version = 11 : i64} {
  func.func @_nonlocal_kernel(%arg0: i32, %arg1: i32, %arg2: memref<1x4x256xf32, #tpu.memory_space<vmem>>, %arg3: memref<24x4xf32, #tpu.memory_space<vmem>>, %arg4: memref<24x1xf32, #tpu.memory_space<vmem>>, %arg5: memref<4x8xf32, #tpu.memory_space<vmem>>, %arg6: memref<4x1xf32, #tpu.memory_space<vmem>>, %arg7: memref<1x4x256xf32, #tpu.memory_space<vmem>>, %arg8: memref<24x256xf32, #tpu.memory_space<vmem>>, %arg9: memref<8x256xf32, #tpu.memory_space<vmem>>) attributes {dimension_semantics = [#tpu.dimension_semantics<parallel>, #tpu.dimension_semantics<arbitrary>], iteration_bounds = array<i64: 2, 2>, scalar_prefetch = 0 : i64, scratch_operands = 2 : i64, tpu.core_type = #tpu.core_type<tc>, window_params = [{transform_indices = @transform_0, window_bounds = array<i64: 1, 4, 256>}, {pipeline_mode = #tpu.pipeline_mode<synchronous>, transform_indices = @transform_1, window_bounds = array<i64: 24, 4>}, {pipeline_mode = #tpu.pipeline_mode<synchronous>, transform_indices = @transform_2, window_bounds = array<i64: 24, 1>}, {pipeline_mode = #tpu.pipeline_mode<synchronous>, transform_indices = @transform_3, window_bounds = array<i64: 4, 8>}, {pipeline_mode = #tpu.pipeline_mode<synchronous>, transform_indices = @transform_4, window_bounds = array<i64: 4, 1>}, {transform_indices = @transform_5, window_bounds = array<i64: 1, 4, 256>}]} {
    %c0_i32 = arith.constant 0 : i32
    %0 = arith.cmpi eq, %arg1, %c0_i32 : i32
    %1 = arith.extui %0 : i1 to i32
    %c0_i32_0 = arith.constant 0 : i32
    %2 = arith.cmpi ne, %1, %c0_i32_0 : i32
    scf.if %2 {
      %c0_10 = arith.constant 0 : index
      %c0_11 = arith.constant 0 : index
      %c0_12 = arith.constant 0 : index
      %32 = vector.load %arg2[%c0_10, %c0_11, %c0_12] : memref<1x4x256xf32, #tpu.memory_space<vmem>>, vector<1x4x256xf32>
      %33 = vector.shape_cast %32 : vector<1x4x256xf32> to vector<4x256xf32>
      %c0_13 = arith.constant 0 : index
      %c0_14 = arith.constant 0 : index
      %34 = vector.load %arg3[%c0_13, %c0_14] : memref<24x4xf32, #tpu.memory_space<vmem>>, vector<24x4xf32>
      %cst_15 = arith.constant dense<0.000000e+00> : vector<24x256xf32>
      %35 = tpu.matmul %34, %33, %cst_15 {dimension_numbers = #tpu.dot_dimension_numbers<[1], [0], [0], [1], [0, 0, 1, 1], [], []>} : vector<24x4xf32>, vector<4x256xf32>, vector<24x256xf32> -> vector<24x256xf32>
      %c0_16 = arith.constant 0 : index
      %c0_17 = arith.constant 0 : index
      %36 = vector.load %arg4[%c0_16, %c0_17] : memref<24x1xf32, #tpu.memory_space<vmem>>, vector<24x1xf32>
      %37 = vector.broadcast %36 : vector<24x1xf32> to vector<24x256xf32>
      %38 = arith.addf %35, %37 : vector<24x256xf32>
      %c0_18 = arith.constant 0 : index
      %c0_19 = arith.constant 0 : index
      %39 = vector.load %arg8[%c0_18, %c0_19] : memref<24x256xf32, #tpu.memory_space<vmem>>, vector<24x256xf32>
      tpu.vector_store %arg8[%c0_18, %c0_19], %38 {strides = array<i32>} : memref<24x256xf32, #tpu.memory_space<vmem>>, vector<24x256xf32>,
      %cst_20 = arith.constant 0.000000e+00 : f32
      %40 = vector.broadcast %cst_20 : f32 to vector<8x256xf32>
      %c0_21 = arith.constant 0 : index
      %c0_22 = arith.constant 0 : index
      %41 = vector.load %arg9[%c0_21, %c0_22] : memref<8x256xf32, #tpu.memory_space<vmem>>, vector<8x256xf32>
      tpu.vector_store %arg9[%c0_21, %c0_22], %40 {strides = array<i32>} : memref<8x256xf32, #tpu.memory_space<vmem>>, vector<8x256xf32>,
    } else {
    }
    %c128_i32 = arith.constant 128 : i32
    %3 = arith.muli %arg1, %c128_i32 : i32
    %4 = tpu.assume_multiple %3, 128 : i32
    %c0 = arith.constant 0 : index
    %5 = arith.index_cast %4 : i32 to index
    %6 = vector.load %arg8[%c0, %5] : memref<24x256xf32, #tpu.memory_space<vmem>>, vector<8x128xf32>
    %c8 = arith.constant 8 : index
    %c0_1 = arith.constant 0 : index
    %7 = vector.load %arg8[%c8, %c0_1] : memref<24x256xf32, #tpu.memory_space<vmem>>, vector<8x256xf32>
    %c16 = arith.constant 16 : index
    %8 = arith.index_cast %4 : i32 to index
    %9 = vector.load %arg8[%c16, %8] : memref<24x256xf32, #tpu.memory_space<vmem>>, vector<8x128xf32>
    %10 = arith.truncf %7 : vector<8x256xf32> to vector<8x256xbf16>
    %11 = arith.truncf %9 : vector<8x128xf32> to vector<8x128xbf16>
    %cst = arith.constant dense<0.000000e+00> : vector<256x128xf32>
    %12 = tpu.matmul %10, %11, %cst {dimension_numbers = #tpu.dot_dimension_numbers<[0], [0], [1], [1], [0, 1, 1, 1], [], []>} : vector<8x256xbf16>, vector<8x128xbf16>, vector<256x128xf32> -> vector<256x128xf32>
    %cst_2 = arith.constant dense<0xFF800000> : vector<128xf32>
    %13 = vector.multi_reduction <maximumf>, %12, %cst_2 [0] : vector<256x128xf32> to vector<128xf32>
    %14 = vector.shape_cast %13 : vector<128xf32> to vector<1x128xf32>
    %15 = vector.broadcast %14 : vector<1x128xf32> to vector<256x128xf32>
    %16 = arith.subf %12, %15 : vector<256x128xf32>
    %17 = math.exp %16 : vector<256x128xf32>
    %cst_3 = arith.constant dense<0.000000e+00> : vector<128xf32>
    %18 = vector.multi_reduction <add>, %17, %cst_3 [0] : vector<256x128xf32> to vector<128xf32>
    %19 = vector.shape_cast %18 : vector<128xf32> to vector<1x128xf32>
    %20 = tpu.reciprocal %19 {approx = true} : vector<1x128xf32> -> vector<1x128xf32>
    %21 = vector.broadcast %20 : vector<1x128xf32> to vector<8x128xf32>
    %22 = arith.mulf %6, %21 : vector<8x128xf32>
    %23 = arith.truncf %22 : vector<8x128xf32> to vector<8x128xbf16>
    %c0_4 = arith.constant 0 : index
    %c0_5 = arith.constant 0 : index
    %24 = vector.load %arg9[%c0_4, %c0_5] : memref<8x256xf32, #tpu.memory_space<vmem>>, vector<8x256xf32>
    %25 = arith.truncf %17 : vector<256x128xf32> to vector<256x128xbf16>
    %cst_6 = arith.constant dense<0.000000e+00> : vector<8x256xf32>
    %26 = tpu.matmul %23, %25, %cst_6 {dimension_numbers = #tpu.dot_dimension_numbers<[1], [1], [0], [0], [0, 0, 1, 0], [], []>} : vector<8x128xbf16>, vector<256x128xbf16>, vector<8x256xf32> -> vector<8x256xf32>
    %27 = arith.addf %24, %26 : vector<8x256xf32>
    %c0_7 = arith.constant 0 : index
    %c0_8 = arith.constant 0 : index
    %28 = vector.load %arg9[%c0_7, %c0_8] : memref<8x256xf32, #tpu.memory_space<vmem>>, vector<8x256xf32>
    tpu.vector_store %arg9[%c0_7, %c0_8], %27 {strides = array<i32>} : memref<8x256xf32, #tpu.memory_space<vmem>>, vector<8x256xf32>,
    %c1_i32 = arith.constant 1 : i32
    %29 = arith.cmpi eq, %arg1, %c1_i32 : i32
    %30 = arith.extui %29 : i1 to i32
    %c0_i32_9 = arith.constant 0 : i32
    %31 = arith.cmpi ne, %30, %c0_i32_9 : i32
    scf.if %31 {
      %c0_10 = arith.constant 0 : index
      %c0_11 = arith.constant 0 : index
      %32 = vector.load %arg5[%c0_10, %c0_11] : memref<4x8xf32, #tpu.memory_space<vmem>>, vector<4x8xf32>
      %c0_12 = arith.constant 0 : index
      %c0_13 = arith.constant 0 : index
      %33 = vector.load %arg9[%c0_12, %c0_13] : memref<8x256xf32, #tpu.memory_space<vmem>>, vector<8x256xf32>
      %cst_14 = arith.constant dense<0.000000e+00> : vector<4x256xf32>
      %34 = tpu.matmul %32, %33, %cst_14 {dimension_numbers = #tpu.dot_dimension_numbers<[1], [0], [0], [1], [0, 0, 1, 1], [], []>} : vector<4x8xf32>, vector<8x256xf32>, vector<4x256xf32> -> vector<4x256xf32>
      %c0_15 = arith.constant 0 : index
      %c0_16 = arith.constant 0 : index
      %35 = vector.load %arg6[%c0_15, %c0_16] : memref<4x1xf32, #tpu.memory_space<vmem>>, vector<4x1xf32>
      %36 = vector.broadcast %35 : vector<4x1xf32> to vector<4x256xf32>
      %37 = arith.addf %34, %36 : vector<4x256xf32>
      %c0_17 = arith.constant 0 : index
      %c0_18 = arith.constant 0 : index
      %c0_19 = arith.constant 0 : index
      %38 = vector.load %arg7[%c0_17, %c0_18, %c0_19] : memref<1x4x256xf32, #tpu.memory_space<vmem>>, vector<1x4x256xf32>
      %39 = vector.shape_cast %38 : vector<1x4x256xf32> to vector<4x256xf32>
      %40 = vector.shape_cast %37 : vector<4x256xf32> to vector<1x4x256xf32>
      tpu.vector_store %arg7[%c0_17, %c0_18, %c0_19], %40 {strides = array<i32>} : memref<1x4x256xf32, #tpu.memory_space<vmem>>, vector<1x4x256xf32>,
    } else {
    }
    return
  }
  func.func @transform_0(%arg0: i32, %arg1: i32) -> (i32, i32, i32) {
    %c0_i32 = arith.constant 0 : i32
    %c0_i32_0 = arith.constant 0 : i32
    %c0_i32_1 = arith.constant 0 : i32
    return %arg0, %c0_i32, %c0_i32_0 : i32, i32, i32
  }
  func.func @transform_1(%arg0: i32, %arg1: i32) -> (i32, i32) {
    %c0_i32 = arith.constant 0 : i32
    %c0_i32_0 = arith.constant 0 : i32
    %c0_i32_1 = arith.constant 0 : i32
    return %c0_i32, %c0_i32_0 : i32, i32
  }
  func.func @transform_2(%arg0: i32, %arg1: i32) -> (i32, i32) {
    %c0_i32 = arith.constant 0 : i32
    %c0_i32_0 = arith.constant 0 : i32
    %c0_i32_1 = arith.constant 0 : i32
    return %c0_i32, %c0_i32_0 : i32, i32
  }
  func.func @transform_3(%arg0: i32, %arg1: i32) -> (i32, i32) {
    %c0_i32 = arith.constant 0 : i32
    %c0_i32_0 = arith.constant 0 : i32
    %c0_i32_1 = arith.constant 0 : i32
    return %c0_i32, %c0_i32_0 : i32, i32
  }
  func.func @transform_4(%arg0: i32, %arg1: i32) -> (i32, i32) {
    %c0_i32 = arith.constant 0 : i32
    %c0_i32_0 = arith.constant 0 : i32
    %c0_i32_1 = arith.constant 0 : i32
    return %c0_i32, %c0_i32_0 : i32, i32
  }
  func.func @transform_5(%arg0: i32, %arg1: i32) -> (i32, i32, i32) {
    %c0_i32 = arith.constant 0 : i32
    %c0_i32_0 = arith.constant 0 : i32
    %c0_i32_1 = arith.constant 0 : i32
    return %arg0, %c0_i32, %c0_i32_0 : i32, i32, i32
  }
}

</mosaic_0001>

<bundles_post_ra>
// kernel: tpu_custom_call.1
= control target key start
LH: loop header
LB: loop body
LE: loop exit
PB: predicated region body
PF: predicated region fallthrough
CT: control target
= control target key end

     0   :  { %10 = vsyncpa [#allocation5], 0  ;;  %s1856_s0 = inlined_call_operand.vmem [shape: f32[2,4,256], index: 0, kind: input, shape index: {}]   ;;  %s1857_s1 = inlined_call_operand.vmem [shape: f32[24,4], index: 1, kind: input, shape index: {}]   ;;  %s1858_s2 = inlined_call_operand.vmem [shape: f32[24,1], index: 2, kind: input, shape index: {}]   ;;  %s1859_s3 = inlined_call_operand.vmem [shape: f32[4,8], index: 3, kind: input, shape index: {}]   ;;  %s1860_s4 = inlined_call_operand.vmem [shape: f32[4,1], index: 4, kind: input, shape index: {}]   ;;  %s1861_s5 = inlined_call_operand.hbm [shape: f32[2,4,256], index: 5, kind: output, shape index: {}]  }
   0x1   :  { %12 = vsyncpa [#allocation5 + $0x1], 0  ;;  %s1431_s18 = smov 0   ;;  %s1433_s19 = smov 0  }
   0x2   :  { %s1435_s20 = smov 0   ;;  %s1437_s21 = smov 0  }
   0x3   :  { %s1439_s22 = smov 0   ;;  %s1441_s23 = smov 0  }
   0x4   :  { %s1443_s24 = smov 0   ;;  %s1445_s25 = smov 0  }
   0x5 LB: > { %s1043_s26 = sadd.s32 4294967295, %s1394_s25   ;;  %s1044_s27 = sadd.s32 4294967294, %s1394_s25   ;;  %s1394_s25 = sphi %s1445_s25, %s18_s25   ;;  %s1390_s24 = sphi %s1443_s24, %s1870_s24   ;;  %s1386_s23 = sphi %s1441_s23, %s1869_s23   ;;  %s1382_s22 = sphi %s1439_s22, %s1868_s22   ;;  %s1378_s21 = sphi %s1437_s21, %s1867_s21   ;;  %s1374_s20 = sphi %s1435_s20, %s1866_s20   ;;  %s1370_s19 = sphi %s1433_s19, %s1865_s19   ;;  %s1366_s18 = sphi %s1431_s18, %s1864_s18  }
   0x6   : > { %s27_s28 = sadd.s32 1, %s1386_s23  ;;  %s30_s29 = sadd.s32 1, %s1390_s24 }
   0x7   : > { %p28_p0 = scmp.ge.s32.totalorder %s27_s28, 2  ;;  %p157_p1 = scmp.ne.s32.totalorder %s1374_s20, %s1370_s19 }
   0x8   : > { %p158_p2 = scmp.eq.s32.totalorder %s1043_s26, 3  ;;  %p163_p4 = scmp.ne.s32.totalorder %s1370_s19, %s1366_s18 }
   0x9   : > { %s1872_s28 = smov (%p28_p0, %s27_s28), 0  ;;  %s1874_s29 = smov (!%p28_p0, %s30_s29), %s1390_s24 }
   0xa   : > { %p1480_p3 = por %p158_p2, %p157_p1  ;;  %p32_p5 = scmp.ge.s32.totalorder %s1874_s29, 2 }
   0xb   : > { %p164_p6 = scmp.eq.s32.totalorder %s1044_s27, 3  ;;  %p1047_p7 = scmp.ge.s32.totalorder %s1394_s25, 1 }
   0xc   : > { %p202_p8 = scmp.lt.s32.totalorder %s1394_s25, 5  ;;  %s1876_s29 = smov (%p32_p5, %s1874_s29), 0 }
   0xd   : > { %p1490_p9 = por %p164_p6, %p163_p4  ;;  %s144_s7 = ssub.s32 %s1390_s24, %s1876_s29 }
   0xe   : > { %p203_p10 = pnand %p1047_p7, %p202_p8  ;;  %s147_s8 = sadd.s32 1, %s1374_s20 }
   0xf   : > { %p145_p11 = scmp.eq.s32.totalorder %s144_s7, 0  ;;  %s227_s10 = sand.u32 (!%p203_p10), 1, %s1370_s19  }
  0x10   : > { %206 = sbr.rel (%p203_p10) target bundleno = 1158 (0x486), region = 40  ;;  %p230_p12 = scmp.lt.s32.totalorder (!%p203_p10), %s1382_s22, 1 }
  0x11   : > { %s1498_s9 = scalar_select %p145_p11, %s1374_s20, %s147_s8  }
  0x12   : > { %s1504_s11 = sshll.u32 (!%p203_p10), %s227_s10, 3  ;;  %p1051_p13 = scmp.ne.s32.totalorder (!%p203_p10), %s1378_s21, 0 }
  0x13   : > { %s229_s17 = scalar_lea.vmem (!%p203_p10), [#allocation4], %s1504_s11 }
  0x15   : > { %s231_s12 = scalar_select %p230_p12, %s1382_s22, 1 }
  0x16   : > { %239 = sbr.rel (%p1051_p13) target bundleno = 234 (0xea), region = 44 }
  0x17   : > { %s1082_s13 = sshll.u32 %s231_s12, 3 }
  0x18   : > { %s234_s16 = scalar_lea.vmem %s1856_s0, %s1082_s13 }
  0x1b   : > { %v240_v0 = vld [vmem:[%s234_s16] sm:$0xff]  ;;  %vm274_vm0 = vcmask 1043456   ;;  %v1396_v2 = vmov 0.0   ;;  %vm264_vm1 = vcmask 31744   ;;  %v242_v4 = vld [vmem:[%s1857_s1 + $0x8] sm:$0xff]  ;;  %v1397_v5 = vmov 0  }
  0x1c   : > { %v263_v1 = vcombine.high %v240_v0, %v240_v0  ;;  %343 = vmatprep.mubr.f32.mxu0 %v1396_v2  ;;  %368 = vst [vmem:[#allocation3] sm:$0xff] %v1396_v2  ;;  %369 = vst [vmem:[#allocation3 + $0x8] sm:$0xff] %v1396_v2  ;;  %349 = vmatprep.mubr.f32.mxu1 %v1396_v2  ;;  %v241_v3 = vld [vmem:[%s1857_s1] sm:$0xff]  ;;  %v246_v7 = vld [vmem:[%s1858_s2 + $0x10] sm:$0xff] }
  0x1d   : > { %1232 = vset.pattern.permute.xlu0 %v1397_v5  ;;  %1233 = vset.pattern.permute.xlu1 %v1397_v5  ;;  %v244_v6 = vld [vmem:[%s1858_s2] sm:$0xff]  ;;  %v243_v8 = vld [vmem:[%s1857_s1 + $0x10] sm:$0xff]  ;;  %v245_v9 = vld [vmem:[%s1858_s2 + $0x8] sm:$0xff] }
  0x1e   : > { %1052 = vmatprep.subr.msk.mxu0 %vm274_vm0, %v263_v1  ;;  %1153 = vmatprep.subr.msk.mxu1 %vm274_vm0, %v263_v1 }
  0x1f   : > { %1053 = vmatpush1.msk.msra.mxu0 %vm274_vm0, %v240_v0  ;;  %1154 = vmatpush1.msk.msra.mxu1 %vm274_vm0, %v240_v0 }
  0x20   : > { %1054 = vmatmul.mubr.msk.f32.vlgmr.msra.gmra.mxu0 %vm264_vm1, %v241_v3  ;;  %1055 = vmatmul.mubr.msk.f32.vlgmr.msra.gmra.mxu1 %vm264_vm1, %v242_v4 }
  0x21   : > { %355 = vmatprep.mubr.f32.mxu1 %v1396_v2  ;;  %249 = vperm.xlu0 %1232, %v244_v6  }
  0x22   : > { %259 = vperm.xlu1 %1233, %v246_v7  }
  0x24   : > { %1056 = vmatmul.mubr.msk.f32.gmra.mxu1 %vm264_vm1, %v243_v8 }
  0x25   : > { %254 = vperm.xlu0 %1232, %v245_v9  }
  0x9c   : > { %v250_v10 = vpop.permute.xlu0 %249 }
  0x9d   : > { %v260_v16 = vpop.permute.xlu1 %259 }
  0xa0   : > { %v255_v11 = vpop.permute.xlu0 %254 }
  0xe0   : > { %v345_v12 = vpop.f32.mrf.mxu0  ;;  %v351_v13 = vpop.f32.mrf.mxu1 }
  0xe1   : > { %v346_v14 = vadd.f32 %v345_v12, %v250_v10  ;;  %v352_v15 = vadd.f32 %v351_v13, %v255_v11 }
  0xe2   : > { %v347_v17 = vpop.f32.mrf.mxu0  ;;  %v353_v18 = vpop.f32.mrf.mxu1 }
  0xe3   : > { %362 = vst [vmem:[#allocation2] sm:$0xff] %v346_v14  ;;  %364 = vst [vmem:[#allocation2 + $0x10] sm:$0xff] %v352_v15  ;;  %v348_v19 = vadd.f32 %v347_v17, %v250_v10  ;;  %v354_v20 = vadd.f32 %v353_v18, %v255_v11 }
  0xe4   : > { %v357_v21 = vpop.f32.mrf.mxu1 }
  0xe5   : > { %363 = vst [vmem:[#allocation2 + $0x8] sm:$0xff] %v348_v19  ;;  %365 = vst [vmem:[#allocation2 + $0x18] sm:$0xff] %v354_v20  ;;  %v358_v22 = vadd.f32 %v357_v21, %v260_v16 }
  0xe6   : > { %v359_v23 = vpop.f32.mrf.mxu1 }
  0xe7   : > { %366 = vst [vmem:[#allocation2 + $0x20] sm:$0xff] %v358_v22  ;;  %v360_v24 = vadd.f32 %v359_v23, %v260_v16 }
  0xe9   : > { %367 = vst [vmem:[#allocation2 + $0x28] sm:$0xff] %v360_v24 }
  0xea PF: > { %v376_v25 = vld [vmem:[#allocation2 + $0x10] sm:$0xff]  ;;  %s1057_s8 = sshll.u32 %s1378_s21, 7  ;;  %vm463_vm2 = vcmask 1043456   ;;  %vm414_vm3 = vcmask 64512   ;;  %p1075_p0 = scmp.ne.s32.totalorder %s1378_s21, 1 }
  0xeb   : > { %v379_v26 = vpack.c.bf16 %v376_v25, %v376_v25  ;;  %s371_s12 = sshra.s32 %s1057_s8, 7 }
  0xec   : > { %s1058_s13 = sshll.u32 %s371_s12, 3  ;;  %v377_v30 = vld [vmem:[#allocation2 + $0x18] sm:$0xff] }
  0xed   : > { %382 = vxpose.xlu0.c.b16.start.end [1/1] (short) %v379_v26, 128  ;;  %s1538_s14 = scalar_lea.vmem [#allocation2], %s1058_s13  ;;  %v380_v31 = vpack.c.bf16 %v377_v30, %v377_v30 }
  0xf0   : > { %v378_v27 = vld [vmem:[%s1538_s14 + $0x20] sm:$0xff] }
  0xf1   : > { %v381_v28 = vpack.c.bf16 %v378_v27, %v378_v27 }
  0xf3   : > { %1155 = vmatprep.subr.msk.bf16.mxu0 %vm463_vm2, %v381_v28  ;;  %v465_v29 = vsel %vm463_vm2, %v381_v28, 0 }
  0xf4   : > { %1120 = vmatpush3.bf16.msra.mxu0 %v465_v29 }
 0x10a   : > { %398 = vxpose.xlu0.c.b16.start.end [1/1] (short) %v380_v31, 128 }
 0x14f   : > { %v390_v32 = vpop.trf.xlu0 }
 0x150   : > { %1121 = vmatprep.mubr.msk.bf16.mxu0 %vm414_vm3, %v390_v32 }
 0x153   : > { %v391_v33 = vpop.trf.xlu0 }
 0x154   : > { %1122 = vmatmul.mubr.msk.bf16.vlgmr.msra.gmra.mxu0 %vm414_vm3, %v391_v33 }
 0x157   : > { %v392_v34 = vpop.trf.xlu0 }
 0x158   : > { %1125 = vmatprep.mubr.msk.bf16.mxu0 %vm414_vm3, %v392_v34 }
 0x15b   : > { %v393_v35 = vpop.trf.xlu0 }
 0x15c   : > { %1126 = vmatmul.mubr.msk.bf16.gmra.mxu0 %vm414_vm3, %v393_v35 }
 0x15f   : > { %v394_v36 = vpop.trf.xlu0 }
 0x160   : > { %1129 = vmatprep.mubr.msk.bf16.mxu0 %vm414_vm3, %v394_v36 }
 0x163   : > { %v395_v37 = vpop.trf.xlu0 }
 0x164   : > { %1130 = vmatmul.mubr.msk.bf16.gmra.mxu0 %vm414_vm3, %v395_v37 }
 0x167   : > { %v396_v38 = vpop.trf.xlu0 }
 0x168   : > { %1133 = vmatprep.mubr.msk.bf16.mxu0 %vm414_vm3, %v396_v38 }
 0x16b   : > { %v397_v39 = vpop.trf.xlu0 }
 0x16c   : > { %1134 = vmatmul.mubr.msk.bf16.gmra.mxu0 %vm414_vm3, %v397_v39 }
 0x16f   : > { %v406_v40 = vpop.trf.xlu0 }
 0x170   : > { %1137 = vmatprep.mubr.msk.bf16.mxu0 %vm414_vm3, %v406_v40 }
 0x173   : > { %v407_v41 = vpop.trf.xlu0 }
 0x174   : > { %1138 = vmatmul.mubr.msk.bf16.gmra.mxu0 %vm414_vm3, %v407_v41 }
 0x177   : > { %v408_v42 = vpop.trf.xlu0 }
 0x178   : > { %1141 = vmatprep.mubr.msk.bf16.mxu0 %vm414_vm3, %v408_v42 }
 0x17b   : > { %v409_v43 = vpop.trf.xlu0 }
 0x17c   : > { %1142 = vmatmul.mubr.msk.bf16.gmra.mxu0 %vm414_vm3, %v409_v43 }
 0x17f   : > { %v410_v44 = vpop.trf.xlu0 }
 0x180   : > { %1145 = vmatprep.mubr.msk.bf16.mxu0 %vm414_vm3, %v410_v44 }
 0x183   : > { %v411_v45 = vpop.trf.xlu0 }
 0x184   : > { %1146 = vmatmul.mubr.msk.bf16.gmra.mxu0 %vm414_vm3, %v411_v45 }
 0x187   : > { %v412_v46 = vpop.trf.xlu0 }
 0x188   : > { %1149 = vmatprep.mubr.msk.bf16.mxu0 %vm414_vm3, %v412_v46 }
 0x18b   : > { %v413_v47 = vpop.trf.xlu0 }
 0x18c   : > { %1150 = vmatmul.mubr.msk.bf16.gmra.mxu0 %vm414_vm3, %v413_v47 }
 0x214   : > { %v1557_v48 = vpop.f32.mrf.mxu0 }
 0x216   : > { %v1559_v49 = vpop.f32.mrf.mxu0 }
 0x218   : > { %v1561_v50 = vpop.f32.mrf.mxu0 }
 0x21a   : > { %v1563_v51 = vpop.f32.mrf.mxu0 }
 0x21c   : > { %v1565_v52 = vpop.f32.mrf.mxu0 }
 0x21d   : > { %v630_v11 = vmax.f32 %v1557_v48, %v1565_v52 }
 0x21e   : > { %v1567_v53 = vpop.f32.mrf.mxu0 }
 0x21f   : > { %v628_v12 = vmax.f32 %v1559_v49, %v1567_v53 }
 0x220   : > { %v1569_v54 = vpop.f32.mrf.mxu0 }
 0x221   : > { %v631_v9 = vmax.f32 %v1561_v50, %v1569_v54 }
 0x222   : > { %v1571_v55 = vpop.f32.mrf.mxu0 }
 0x223   : > { %v629_v13 = vmax.f32 %v1563_v51, %v1571_v55 }
 0x224   : > { %v1573_v56 = vpop.f32.mrf.mxu0 }
 0x225   : > { %v634_v16 = vmax.f32 %v630_v11, %v1573_v56 }
 0x226   : > { %v1575_v57 = vpop.f32.mrf.mxu0 }
 0x227   : > { %v632_v17 = vmax.f32 %v628_v12, %v1575_v57 }
 0x228   : > { %v1577_v58 = vpop.f32.mrf.mxu0 }
 0x229   : > { %v635_v14 = vmax.f32 %v631_v9, %v1577_v58 }
 0x22a   : > { %v1579_v59 = vpop.f32.mrf.mxu0 }
 0x22b   : > { %v633_v18 = vmax.f32 %v629_v13, %v1579_v59 }
 0x22c   : > { %v1581_v60 = vpop.f32.mrf.mxu0 }
 0x22d   : > { %v638_v21 = vmax.f32 %v634_v16, %v1581_v60 }
 0x22e   : > { %v1583_v61 = vpop.f32.mrf.mxu0 }
 0x22f   : > { %v636_v22 = vmax.f32 %v632_v17, %v1583_v61 }
 0x230   : > { %v1585_v62 = vpop.f32.mrf.mxu0 }
 0x231   : > { %v639_v19 = vmax.f32 %v635_v14, %v1585_v62 }
 0x232   : > { %v1587_v63 = vpop.f32.mrf.mxu0 }
 0x233   : > { %v637_v23 = vmax.f32 %v633_v18, %v1587_v63 }
 0x234   : > { %v1589_v0 = vpop.f32.mrf.mxu0 }
 0x235   : > { %v642_v26 = vmax.f32 %v638_v21, %v1589_v0 }
 0x236   : > { %v1591_v1 = vpop.f32.mrf.mxu0 }
 0x237   : > { %v640_v27 = vmax.f32 %v636_v22, %v1591_v1 }
 0x238   : > { %v1593_v2 = vpop.f32.mrf.mxu0 }
 0x239   : > { %v643_v24 = vmax.f32 %v639_v19, %v1593_v2 }
 0x23a   : > { %v1595_v3 = vpop.f32.mrf.mxu0 }
 0x23b   : > { %v641_v28 = vmax.f32 %v637_v23, %v1595_v3 }
 0x23c   : > { %v1597_v4 = vpop.f32.mrf.mxu0 }
 0x23d   : > { %v646_v31 = vmax.f32 %v642_v26, %v1597_v4 }
 0x23e   : > { %v1599_v5 = vpop.f32.mrf.mxu0 }
 0x23f   : > { %v644_v32 = vmax.f32 %v640_v27, %v1599_v5 }
 0x240   : > { %v1601_v6 = vpop.f32.mrf.mxu0 }
 0x241   : > { %v647_v29 = vmax.f32 %v643_v24, %v1601_v6 }
 0x242   : > { %v1603_v7 = vpop.f32.mrf.mxu0 }
 0x243   : > { %v645_v33 = vmax.f32 %v641_v28, %v1603_v7 }
 0x244   : > { %v1605_v8 = vpop.f32.mrf.mxu0 }
 0x245   : > { %v650_v36 = vmax.f32 %v646_v31, %v1605_v8 }
 0x246   : > { %v1609_v10 = vpop.f32.mrf.mxu0 }
 0x247   : > { %v648_v37 = vmax.f32 %v644_v32, %v1609_v10 }
 0x248   : > { %v1618_v15 = vpop.f32.mrf.mxu0 }
 0x249   : > { %v651_v34 = vmax.f32 %v647_v29, %v1618_v15 }
 0x24a   : > { %v1624_v20 = vpop.f32.mrf.mxu0 }
 0x24b   : > { %v649_v38 = vmax.f32 %v645_v33, %v1624_v20 }
 0x24c   : > { %v1630_v25 = vpop.f32.mrf.mxu0 }
 0x24d   : > { %v654_v41 = vmax.f32 %v650_v36, %v1630_v25 }
 0x24e   : > { %v1636_v30 = vpop.f32.mrf.mxu0 }
 0x24f   : > { %v652_v42 = vmax.f32 %v648_v37, %v1636_v30 }
 0x250   : > { %v1642_v35 = vpop.f32.mrf.mxu0 }
 0x251   : > { %v655_v39 = vmax.f32 %v651_v34, %v1642_v35 }
 0x252   : > { %v1648_v40 = vpop.f32.mrf.mxu0 }
 0x253   : > { %v653_v43 = vmax.f32 %v649_v38, %v1648_v40  ;;  %v657_v44 = vmax.f32 %v654_v41, %v655_v39 }
 0x255   : > { %v656_v45 = vmax.f32 %v652_v42, %v653_v43 }
 0x257   : > { %v658_v46 = vmax.f32 %v656_v45, %v657_v44 }
 0x259   : > { %v659_v47 = vrot.slane %v658_v46, 4 }
 0x25b   : > { %v660_v9 = vmax.f32 %v658_v46, %v659_v47 }
 0x25d   : > { %v661_v11 = vrot.slane %v660_v9, 2 }
 0x25f   : > { %v662_v12 = vmax.f32 %v660_v9, %v661_v11 }
 0x261   : > { %v663_v13 = vrot.slane %v662_v12, 1 }
 0x263   : > { %v1653_v14 = vmax.f32 %v662_v12, %v663_v13 }
 0x265   : > { %v665_v16 = vsub.f32 %v1559_v49, %v1653_v14  ;;  %v666_v17 = vsub.f32 %v1563_v51, %v1653_v14  ;;  %v667_v18 = vsub.f32 %v1557_v48, %v1653_v14  ;;  %v668_v19 = vsub.f32 %v1561_v50, %v1653_v14 }
 0x266   : > { %v669_v21 = vsub.f32 %v1567_v53, %v1653_v14  ;;  %v670_v22 = vsub.f32 %v1571_v55, %v1653_v14  ;;  %v671_v23 = vsub.f32 %v1565_v52, %v1653_v14  ;;  %v672_v51 = vsub.f32 %v1569_v54, %v1653_v14 }
 0x267   : > { %v697_v24 = vmul.f32 1.442695, %v665_v16  ;;  %v699_v49 = vmul.f32 1.442695, %v666_v17  ;;  %v701_v26 = vmul.f32 1.442695, %v667_v18  ;;  %v673_v48 = vsub.f32 %v1575_v57, %v1653_v14 }
 0x268   : > { %v703_v27 = vmul.f32 1.442695, %v668_v19  ;;  %v705_v50 = vmul.f32 1.442695, %v669_v21  ;;  %v674_v53 = vsub.f32 %v1579_v59, %v1653_v14  ;;  %v707_v55 = vmul.f32 1.442695, %v670_v22 }
 0x269   : > { %1235 = vpow2.f32 %v697_v24  ;;  %v675_v52 = vsub.f32 %v1573_v56, %v1653_v14  ;;  %v709_v28 = vmul.f32 1.442695, %v671_v23  ;;  %v676_v29 = vsub.f32 %v1577_v58, %v1653_v14 }
 0x26a   : > { %1237 = vpow2.f32 %v699_v49  ;;  %v711_v54 = vmul.f32 1.442695, %v672_v51  ;;  %v677_v57 = vsub.f32 %v1583_v61, %v1653_v14  ;;  %v713_v31 = vmul.f32 1.442695, %v673_v48 }
 0x26b   : > { %1239 = vpow2.f32 %v701_v26  ;;  %v678_v59 = vsub.f32 %v1587_v63, %v1653_v14  ;;  %v715_v32 = vmul.f32 1.442695, %v674_v53  ;;  %v679_v56 = vsub.f32 %v1581_v60, %v1653_v14 }
 0x26c   : > { %1241 = vpow2.f32 %v703_v27  ;;  %v717_v33 = vmul.f32 1.442695, %v675_v52  ;;  %v680_v58 = vsub.f32 %v1585_v62, %v1653_v14  ;;  %v719_v34 = vmul.f32 1.442695, %v676_v29 }
 0x26d   : > { %1243 = vpow2.f32 %v705_v50  ;;  %v681_v61 = vsub.f32 %v1591_v1, %v1653_v14  ;;  %v721_v36 = vmul.f32 1.442695, %v677_v57  ;;  %v682_v63 = vsub.f32 %v1595_v3, %v1653_v14 }
 0x26e   : > { %1245 = vpow2.f32 %v707_v55  ;;  %v723_v37 = vmul.f32 1.442695, %v678_v59  ;;  %v683_v60 = vsub.f32 %v1589_v0, %v1653_v14  ;;  %v725_v38 = vmul.f32 1.442695, %v679_v56 }
 0x26f   : > { %1247 = vpow2.f32 %v709_v28  ;;  %v684_v62 = vsub.f32 %v1593_v2, %v1653_v14  ;;  %v727_v39 = vmul.f32 1.442695, %v680_v58  ;;  %v685_v1 = vsub.f32 %v1599_v5, %v1653_v14 }
 0x270   : > { %1249 = vpow2.f32 %v711_v54  ;;  %v729_v41 = vmul.f32 1.442695, %v681_v61  ;;  %v686_v3 = vsub.f32 %v1603_v7, %v1653_v14  ;;  %v731_v43 = vmul.f32 1.442695, %v682_v63 }
 0x271   : > { %1251 = vpow2.f32 %v713_v31  ;;  %v687_v44 = vsub.f32 %v1597_v4, %v1653_v14  ;;  %v688_v2 = vsub.f32 %v1601_v6, %v1653_v14  ;;  %v733_v45 = vmul.f32 1.442695, %v683_v60 }
 0x272   : > { %1253 = vpow2.f32 %v715_v32  ;;  %v735_v46 = vmul.f32 1.442695, %v684_v62  ;;  %v689_v4 = vsub.f32 %v1609_v10, %v1653_v14  ;;  %v690_v6 = vsub.f32 %v1624_v20, %v1653_v14 }
 0x273   : > { %1255 = vpow2.f32 %v717_v33  ;;  %v737_v11 = vmul.f32 1.442695, %v685_v1  ;;  %v739_v13 = vmul.f32 1.442695, %v686_v3  ;;  %v691_v19 = vsub.f32 %v1605_v8, %v1653_v14 }
 0x274   : > { %1257 = vpow2.f32 %v719_v34  ;;  %v692_v10 = vsub.f32 %v1618_v15, %v1653_v14  ;;  %v741_v20 = vmul.f32 1.442695, %v687_v44  ;;  %v743_v22 = vmul.f32 1.442695, %v688_v2 }
 0x275   : > { %1259 = vpow2.f32 %v721_v36  ;;  %v693_v26 = vsub.f32 %v1636_v30, %v1653_v14  ;;  %v694_v8 = vsub.f32 %v1648_v40, %v1653_v14  ;;  %v745_v15 = vmul.f32 1.442695, %v689_v4 }
 0x276   : > { %v1697_v42 = vpop.eup %1235  ;;  %1261 = vpow2.f32 %v723_v37  ;;  %v747_v27 = vmul.f32 1.442695, %v690_v6  ;;  %v695_v55 = vsub.f32 %v1630_v25, %v1653_v14  ;;  %v696_v30 = vsub.f32 %v1642_v35, %v1653_v14 }
 0x277   : > { %v1701_v0 = vpop.eup %1237  ;;  %1263 = vpow2.f32 %v725_v38  ;;  %v749_v40 = vmul.f32 1.442695, %v691_v19  ;;  %v751_v28 = vmul.f32 1.442695, %v692_v10  ;;  %v753_v31 = vmul.f32 1.442695, %v693_v26 }
 0x278   : > { %v1707_v5 = vpop.eup %1239  ;;  %1265 = vpow2.f32 %v727_v39  ;;  %v761_v47 = vadd.f32 %v1701_v0, %v1697_v42  ;;  %v803_v7 = vpack.c.bf16 %v1701_v0, %v1697_v42  ;;  %v755_v25 = vmul.f32 1.442695, %v694_v8 }
 0x279   : > { %v1713_v9 = vpop.eup %1241  ;;  %1267 = vpow2.f32 %v729_v41  ;;  %v757_v32 = vmul.f32 1.442695, %v695_v55  ;;  %v759_v33 = vmul.f32 1.442695, %v696_v30 }
 0x27a   : > { %v1719_v12 = vpop.eup %1243  ;;  %1269 = vpow2.f32 %v731_v43  ;;  %v762_v16 = vadd.f32 %v1707_v5, %v761_v47  ;;  %v804_v17 = vpack.c.bf16 %v1713_v9, %v1707_v5 }
 0x27b   : > { %v1724_v18 = vpop.eup %1245  ;;  %1271 = vpow2.f32 %v733_v45 }
 0x27c   : > { %v1730_v21 = vpop.eup %1247  ;;  %1273 = vpow2.f32 %v735_v46  ;;  %v763_v23 = vadd.f32 %v1713_v9, %v762_v16  ;;  %v805_v24 = vpack.c.bf16 %v1724_v18, %v1719_v12 }
 0x27d   : > { %v1735_v49 = vpop.eup %1249  ;;  %1275 = vpow2.f32 %v737_v11 }
 0x27e   : > { %v1741_v51 = vpop.eup %1251  ;;  %1277 = vpow2.f32 %v739_v13  ;;  %v764_v48 = vadd.f32 %v1719_v12, %v763_v23  ;;  %v806_v50 = vpack.c.bf16 %v1735_v49, %v1730_v21  ;;  %v801_v12 = vld [vmem:[#allocation3] sm:$0xff] }
 0x27f   : > { %v1746_v53 = vpop.eup %1253  ;;  %1279 = vpow2.f32 %v741_v20 }
 0x280   : > { %v1752_v52 = vpop.eup %1255  ;;  %1281 = vpow2.f32 %v743_v22  ;;  %v765_v29 = vadd.f32 %v1724_v18, %v764_v48  ;;  %v807_v54 = vpack.c.bf16 %v1746_v53, %v1741_v51 }
 0x281   : > { %v1757_v57 = vpop.eup %1257  ;;  %1283 = vpow2.f32 %v745_v15 }
 0x282   : > { %v1260_v59 = vpop.eup %1259  ;;  %1285 = vpow2.f32 %v747_v27  ;;  %v766_v35 = vadd.f32 %v1730_v21, %v765_v29  ;;  %v375_v21 = vld [vmem:[%s1538_s14] sm:$0xff] }
 0x283   : > { %v1262_v14 = vpop.eup %1261  ;;  %1287 = vpow2.f32 %v749_v40 }
 0x284   : > { %v1264_v56 = vpop.eup %1263  ;;  %1289 = vpow2.f32 %v751_v28  ;;  %v767_v58 = vadd.f32 %v1735_v49, %v766_v35  ;;  %v809_v34 = vpack.c.bf16 %v1262_v14, %v1260_v59 }
 0x285   : > { %v1266_v61 = vpop.eup %1265  ;;  %1291 = vpow2.f32 %v753_v31 }
 0x286   : > { %v1761_v36 = vpop.eup %1267  ;;  %1293 = vpow2.f32 %v755_v25  ;;  %v768_v63 = vadd.f32 %v1741_v51, %v767_v58  ;;  %v810_v37 = vpack.c.bf16 %v1266_v61, %v1264_v56 }
 0x287   : > { %v1764_v60 = vpop.eup %1269  ;;  %1295 = vpow2.f32 %v757_v32 }
 0x288   : > { %v1766_v38 = vpop.eup %1271  ;;  %1297 = vpow2.f32 %v759_v33  ;;  %v769_v62 = vadd.f32 %v1746_v53, %v768_v63  ;;  %v811_v39 = vpack.c.bf16 %v1764_v60, %v1761_v36 }
 0x289   : > { %v1274_v1 = vpop.eup %1273 }
 0x28a   : > { %v1276_v41 = vpop.eup %1275  ;;  %v770_v3 = vadd.f32 %v1752_v52, %v769_v62  ;;  %v812_v43 = vpack.c.bf16 %v1274_v1, %v1766_v38 }
 0x28b   : > { %v1278_v44 = vpop.eup %1277 }
 0x28c   : > { %v1280_v2 = vpop.eup %1279  ;;  %v771_v45 = vadd.f32 %v1757_v57, %v770_v3  ;;  %v813_v46 = vpack.c.bf16 %v1278_v44, %v1276_v41 }
 0x28d   : > { %v1282_v47 = vpop.eup %1281 }
 0x28e   : > { %v1284_v4 = vpop.eup %1283  ;;  %v772_v6 = vadd.f32 %v1260_v59, %v771_v45  ;;  %v814_v11 = vpack.c.bf16 %v1282_v47, %v1280_v2 }
 0x28f   : > { %v1286_v13 = vpop.eup %1285 }
 0x290   : > { %v1288_v16 = vpop.eup %1287  ;;  %v773_v19 = vadd.f32 %v1262_v14, %v772_v6  ;;  %v815_v10 = vpack.c.bf16 %v1286_v13, %v1284_v4 }
 0x291   : > { %v1290_v20 = vpop.eup %1289 }
 0x292   : > { %v1292_v22 = vpop.eup %1291  ;;  %v774_v23 = vadd.f32 %v1264_v56, %v773_v19  ;;  %v816_v26 = vpack.c.bf16 %v1290_v20, %v1288_v16  ;;  %v808_v56 = vpack.c.bf16 %v1757_v57, %v1752_v52 }
 0x293   : > { %v1294_v8 = vpop.eup %1293 }
 0x294   : > { %v1296_v15 = vpop.eup %1295  ;;  %v775_v27 = vadd.f32 %v1266_v61, %v774_v23  ;;  %v817_v28 = vpack.c.bf16 %v1294_v8, %v1292_v22 }
 0x295   : > { %v1298_v48 = vpop.eup %1297 }
 0x296   : > { %v776_v55 = vadd.f32 %v1761_v36, %v775_v27  ;;  %v818_v30 = vpack.c.bf16 %v1298_v48, %v1296_v15 }
 0x298   : > { %v777_v40 = vadd.f32 %v1764_v60, %v776_v55  ;;  %1101 = vmatprep.subr.bf16.mxu1 %v818_v30 }
 0x299   : > { %1102 = vmatpush3.bf16.xpose.msra.mxu1 %v810_v37 }
 0x29a   : > { %v778_v29 = vadd.f32 %v1766_v38, %v777_v40  ;;  %1103 = vmatprep.subr.bf16.mxu1 %v817_v28 }
 0x29c   : > { %v779_v31 = vadd.f32 %v1274_v1, %v778_v29 }
 0x29e   : > { %v780_v59 = vadd.f32 %v1276_v41, %v779_v31 }
 0x2a0   : > { %v781_v25 = vadd.f32 %v1278_v44, %v780_v59 }
 0x2a1   : > { %1104 = vmatpush3.bf16.xpose.msra.mxu1 %v809_v34 }
 0x2a2   : > { %v782_v35 = vadd.f32 %v1280_v2, %v781_v25  ;;  %1105 = vmatprep.subr.bf16.mxu1 %v816_v26 }
 0x2a4   : > { %v783_v14 = vadd.f32 %v1282_v47, %v782_v35 }
 0x2a6   : > { %v784_v32 = vadd.f32 %v1284_v4, %v783_v14 }
 0x2a8   : > { %v785_v33 = vadd.f32 %v1286_v13, %v784_v32 }
 0x2a9   : > { %1106 = vmatpush3.bf16.xpose.msra.mxu1 %v808_v56 }
 0x2aa   : > { %v786_v58 = vadd.f32 %v1288_v16, %v785_v33  ;;  %1107 = vmatprep.subr.bf16.mxu1 %v815_v10 }
 0x2ac   : > { %v787_v61 = vadd.f32 %v1290_v20, %v786_v58 }
 0x2ae   : > { %v788_v63 = vadd.f32 %v1292_v22, %v787_v61 }
 0x2b0   : > { %v789_v37 = vadd.f32 %v1294_v8, %v788_v63 }
 0x2b1   : > { %1108 = vmatpush3.bf16.xpose.msra.mxu1 %v807_v54 }
 0x2b2   : > { %v790_v38 = vadd.f32 %v1296_v15, %v789_v37  ;;  %1109 = vmatprep.subr.bf16.mxu1 %v814_v11 }
 0x2b4   : > { %v791_v34 = vadd.f32 %v1298_v48, %v790_v38 }
 0x2b6   : > { %v792_v62 = vrot.slane %v791_v34, 4 }
 0x2b8   : > { %v793_v1 = vadd.f32 %v792_v62, %v791_v34 }
 0x2b9   : > { %1110 = vmatpush3.bf16.xpose.msra.mxu1 %v806_v50 }
 0x2ba   : > { %1111 = vmatprep.subr.bf16.mxu1 %v813_v46  ;;  %v794_v52 = vrot.slane %v793_v1, 2 }
 0x2bc   : > { %v795_v57 = vadd.f32 %v794_v52, %v793_v1 }
 0x2be   : > { %v796_v41 = vrot.slane %v795_v57, 1 }
 0x2c0   : > { %v797_v3 = vadd.f32 %v796_v41, %v795_v57 }
 0x2c1   : > { %1112 = vmatpush3.bf16.xpose.msra.mxu1 %v805_v24  ;;  %v802_v24 = vld [vmem:[#allocation3 + $0x8] sm:$0xff] }
 0x2c2   : > { %1113 = vmatprep.subr.bf16.mxu1 %v812_v43  ;;  %1299 = vrcp.f32 %v797_v3 }
 0x2c9   : > { %1114 = vmatpush3.bf16.xpose.msra.mxu1 %v804_v17 }
 0x2ca   : > { %1115 = vmatprep.subr.bf16.mxu1 %v811_v39 }
 0x2cf   : > { %v1300_v49 = vpop.eup %1299 }
 0x2d0   : > { %v799_v51 = vmul.f32 %v1300_v49, %v375_v21 }
 0x2d1   : > { %1116 = vmatpush3.bf16.xpose.msra.mxu1 %v803_v7 }
 0x2d2   : > { %v800_v50 = vpack.c.bf16 %v799_v51, %v799_v51 }
 0x2d4   : > { %1117 = vmatprep.mubr.bf16.mxu1 %v800_v50 }
 0x2d8   : > { %1118 = vmatmul.mubr.bf16.vlgmr.msra.gmra.mxu1 %v800_v50 }
 0x398   : > { %v853_v18 = vpop.f32.mrf.mxu1 }
 0x399   : > { %v860_v53 = vadd.f32 %v853_v18, %v801_v12 }
 0x39a   : > { %v855_v5 = vpop.f32.mrf.mxu1  ;;  %867 = sbr.rel (%p1075_p0) target bundleno = 1135 (0x46f), region = 48 }
 0x39b   : > { %862 = vst [vmem:[#allocation3] sm:$0xff] %v860_v53  ;;  %v861_v9 = vadd.f32 %v855_v5, %v802_v24 }
 0x39c   : > { %v857_v17 = vpop.f32.mrf.mxu1 }
 0x39d   : > { %863 = vst [vmem:[#allocation3 + $0x8] sm:$0xff] %v861_v9 }
 0x39e   : > { %v858_v54 = vpop.f32.mrf.mxu1 }
 0x39f   : > { %v868_v42 = vld [vmem:[%s1859_s3] sm:$0xf]  ;;  %v1398_v0 = vmov 0.0   ;;  %v1399_v39 = vmov 0  }
 0x3a0   : > { %944 = vmatprep.mubr.f32.mxu0 %v1398_v0  ;;  %v871_v7 = vld [vmem:[%s1860_s4] sm:$0xf]  ;;  %1301 = vset.pattern.permute.xlu0 %v1399_v39 }
 0x3a1   : > { %874 = vperm.xlu0 %1301, %v871_v7  }
 0x3a2   : > { %v869_v60 = vld [vmem:[#allocation3] sm:$0xff] }
 0x3a4   : > { %v870_v36 = vld [vmem:[#allocation3 + $0x8] sm:$0xff] }
 0x3a5   : > { %910 = vmatprep.subr.mxu0 %v870_v36 }
 0x3a6   : > { %911 = vmatpush1.msra.mxu0 %v869_v60 }
 0x3a7   : > { %1076 = vmatmul.mubr.msk.f32.vlgmr.msra.gmra.mxu0 %vm414_vm3, %v868_v42 }
 0x41c   : > { %v875_v43 = vpop.permute.xlu0 %874 }
 0x467   : > { %v946_v44 = vpop.f32.mrf.mxu0 }
 0x468   : > { %v947_v45 = vadd.f32 %v946_v44, %v875_v43 }
 0x469   : > { %v948_v2 = vpop.f32.mrf.mxu0 }
 0x46a   : > { %v949_v46 = vadd.f32 %v948_v2, %v875_v43 }
 0x46c   : > { %v953_v47 = vcombine.low %v947_v45, %v949_v46 }
 0x46e   : > { %955 = vst [vmem:[%s229_s17] sm:$0xff] %v953_v47 }
 0x46f PF: > { %s1083_s21 = sshll.u32 %s1382_s22, 7  ;;  %s971_s13 = sshll.u32 %s229_s17, 4  ;;  %s972_s13 = int_to_ptr.vmem [resolvable:$true] %s971_s13 }
 0x470   : > { %s969_s12 = scalar_lea.hbm %s1861_s5, %s1083_s21  ;;  %s957_s14 = scalar_lea.sflag [#allocation5], %s227_s10 }
 0x471   : > { %s1302_s15 = scalar_lea.vmem %s972_s13, 128  ;;  %s1400_s16 = smov [#allocation4]  }
 0x472   : > { %p1303_p1 = scmp.ne.s32.totalorder %s972_s13, %s1302_s15  ;;  %s1306_s26 = sshll.u32 %s1400_s16, 4  ;;  %s1307_s26 = int_to_ptr.vmem [resolvable:$false] %s1306_s26 }
 0x473   : > { %s1308_s27 = scalar_lea.vmem %s1307_s26, 256  ;;  %p1309_p5 = scmp.lt.s32.totalorder %s972_s13, %s1307_s26 }
 0x474   : > { %p1304_p2 = pnand %p1303_p1, %p1480_p3  ;;  %p1310_p6 = scmp.lt.s32.totalorder %s1308_s27, %s1302_s15 }
 0x476   : > { %p1305_p4 = pneg %p1304_p2  ;;  %p1311_p7 = por %p1310_p6, %p1309_p5 }
 0x478   : > { %p1312_p8 = pnand %p1311_p7, %p1305_p4 }
 0x47a   : > { %1315 = shalt.err (!%p1312_p8)
}
 0x47b   : > { %s1316_s22 = scalar_lea.hbm %s969_s12, 128  ;;  %s1320_s17 = scalar_lea.hbm %s1861_s5, 256 }
 0x47c   : > { %p1317_p10 = scmp.ne.s32.totalorder %s969_s12, %s1316_s22  ;;  %p1321_p13 = scmp.lt.s32.totalorder %s969_s12, %s1861_s5 }
 0x47d   : > { %p1322_p0 = scmp.lt.s32.totalorder %s1320_s17, %s1316_s22 }
 0x47e   : > { %p1318_p11 = pnand %p1317_p10, %p1480_p3 }
 0x47f   : > { %p1323_p1 = por %p1322_p0, %p1321_p13 }
 0x480   : > { %p1319_p12 = pneg %p1318_p11 }
 0x482   : > { %p1324_p2 = pnand %p1323_p1, %p1319_p12 }
 0x484   : > { %1327 = shalt.err (!%p1324_p2)
}
 0x485   : > { %1156 = dma.vmem_to_hbm [thread:$0]  (%p1480_p3), %s972_s13, 128, %s969_s12, %s957_s14  }
 0x486 PF: > { %p1162_p4 = scmp.ge.s32.totalorder %s1394_s25, 2  ;;  %s983_s8 = sand.u32 1, %s1366_s18  }
 0x487   : > { %s984_s15 = scalar_lea.sflag [#allocation5], %s983_s8 }
 0x488   : > { %p1159_p5 = pnand %p1162_p4, %p1490_p9 }
 0x48a   : > { %p1160_p6 = pneg %p1159_p5 }
 0x48c   : > { %1361 = dma.done.wait (%p1160_p6), %s984_s15, 128  }
 0x48d   : > { %1363 = vsyncadd (%p1160_p6), %s984_s15, 4294967168  ;;  %s18_s25 = sadd.s32 1, %s1394_s25   ;;  %s1864_s18 = smov %s1370_s19 }
 0x48e   : > { %p15_p7 = scmp.ge.s32.totalorder %s18_s25, 6   ;;  %s1865_s19 = smov %s1374_s20 }
 0x48f   : > { %s1866_s20 = smov %s1498_s9  ;;  %s1867_s21 = smov %s1386_s23 }
 0x490   : > { %s1868_s22 = smov %s1390_s24  ;;  %s1869_s23 = smov %s1872_s28 }
 0x491   : > { %s1870_s24 = smov %s1876_s29  ;;  %17 = sbr.rel (!%p15_p7) target bundleno = 5 (0x5), region = 84 }
 0x496   :  { %989 = vsyncpa [#allocation5], 1 }
 0x497   :  { %991 = vsyncpa [#allocation5 + $0x1], 1 }

</bundles_post_ra>
